<compile_context>
chip_gen: v5e
topology: v5e:2x2
jax: 0.10.0
libtpu: 0.0.40
codegen_flags: <defaults>
</compile_context>

<pallas_src>
import functools

import jax
import jax.numpy as jnp
from jax.experimental import pallas as pl
from jax.experimental.pallas import tpu as pltpu


# ------------------------------ helpers ----------------------------------- #

def _round_up(x, m):
    return ((x + m - 1) // m) * m


def _choose_tiles(n):
    """Pick (padded_n, tm, tk) for the (row, reduction) tiling of A."""
    if n <= 512:
        np_ = _round_up(n, 8)
        return np_, np_, np_          # single whole-array tile
    tm, tk = 256, 512                 # bf16 A tile = 256 KiB -> safe on 64 MiB v7x VMEM
    return _round_up(n, tk), tm, tk   # tk multiple of tm => divisibility holds


def build_normalized_adjacency(edge_index, edge_weight, num_nodes, padded_nodes):
    """Dense A[i, j] = sum of weights of edges j->i, divided by in-degree(i).

    Built in f32, returned as bf16 (padded rows/cols are zero)."""
    src = edge_index[0]
    tgt = edge_index[1]
    a = jnp.zeros((padded_nodes, padded_nodes), jnp.float32).at[tgt, src].add(
        edge_weight.astype(jnp.float32))
    deg = jnp.zeros((padded_nodes,), jnp.float32).at[tgt].add(1.0)
    a = a / jnp.maximum(deg, 1.0)[:, None]
    return a.astype(jnp.bfloat16)


# ------------------------------ Pallas kernel ------------------------------ #

def _fused_sage_kernel(a_ref, xk_ref, xi_ref, w1_ref, b1_ref,
                       ws_ref, bs_ref, w2_ref, b2_ref,
                       out_ref, acc_ref, *, apply_first, apply_head):
    """One SAGE layer, optionally fused with first_lin (before) and
    lin2+log_softmax (after).  Grid = (row tiles, reduction tiles of A)."""
    k = pl.program_id(1)
    nk = pl.num_programs(1)

    @pl.when(k == 0)
    def _init():
        acc_ref[...] = jnp.zeros_like(acc_ref)

    # Hidden features of the k-block of nodes (messages to aggregate).
    if apply_first:
        h_k = jnp.maximum(
            jnp.dot(xk_ref[...], w1_ref[...], preferred_element_type=jnp.float32)
            + b1_ref[...], 0.0)
    else:
        h_k = xk_ref[...]

    # Mean aggregation: accumulate A[i, k] @ h_k  (bf16 in, f32 accumulate).
    acc_ref[...] += jnp.dot(a_ref[...], h_k.astype(jnp.bfloat16),
                            preferred_element_type=jnp.float32)

    @pl.when(k == nk - 1)
    def _finalize():
        # Root (self) features for this row tile.
        if apply_first:
            h_i = jnp.maximum(
                jnp.dot(xi_ref[...], w1_ref[...],
                        preferred_element_type=jnp.float32) + b1_ref[...], 0.0)
        else:
            h_i = xi_ref[...]
        # Fused SAGE transform: [aggr | h_i] @ [Wl^T ; Wr^T] + b, then ReLU.
        hcat = jnp.concatenate([acc_ref[...], h_i], axis=-1)
        z = jnp.maximum(
            jnp.dot(hcat, ws_ref[...], preferred_element_type=jnp.float32)
            + bs_ref[...], 0.0)
        if apply_head:
            logits = (jnp.dot(z, w2_ref[...], preferred_element_type=jnp.float32)
                      + b2_ref[...])
            m = jnp.max(logits, axis=-1, keepdims=True)
            zz = logits - m
            lse = jnp.log(jnp.sum(jnp.exp(zz), axis=-1, keepdims=True))
            out_ref[...] = zz - lse
        else:
            out_ref[...] = z


# ------------------------------- wrapper ----------------------------------- #

def fused_sage_layer(a_bf16, h_in, w1t, b1, ws, bs, w2t, b2,
                     *, apply_first, apply_head, tm, tk):
    np_, fin = h_in.shape
    ni, nk = np_ // tm, np_ // tk
    hidden = ws.shape[1]
    ncols = w2t.shape[1] if apply_head else hidden

    kernel = functools.partial(_fused_sage_kernel,
                               apply_first=apply_first, apply_head=apply_head)

    if nk >= 3:
        # A is the only large streamed operand; 3-deep buffering hides HBM jitter.
        a_spec = pl.BlockSpec((tm, tk), lambda i, k: (i, k),
                              pipeline_mode=pl.Buffered(3))
    else:
        a_spec = pl.BlockSpec((tm, tk), lambda i, k: (i, k))

    grid_spec = pltpu.PrefetchScalarGridSpec(
        num_scalar_prefetch=0,
        grid=(ni, nk),
        in_specs=[
            a_spec,                                          # A tile (bf16)
            pl.BlockSpec((tk, fin), lambda i, k: (k, 0)),    # x / h, k-block
            pl.BlockSpec((tm, fin), lambda i, k: (i, 0)),    # x / h, i-block (root)
            pl.BlockSpec(w1t.shape, lambda i, k: (0, 0)),    # first_lin W^T
            pl.BlockSpec(b1.shape, lambda i, k: (0, 0)),     # first_lin b
            pl.BlockSpec(ws.shape, lambda i, k: (0, 0)),     # [Wl^T ; Wr^T]
            pl.BlockSpec(bs.shape, lambda i, k: (0, 0)),     # SAGE b
            pl.BlockSpec(w2t.shape, lambda i, k: (0, 0)),    # lin2 W^T
            pl.BlockSpec(b2.shape, lambda i, k: (0, 0)),     # lin2 b
        ],
        out_specs=pl.BlockSpec((tm, ncols), lambda i, k: (i, 0)),
        scratch_shapes=[pltpu.VMEM((tm, hidden), jnp.float32)],
    )

    return pl.pallas_call(
        kernel,
        out_shape=jax.ShapeDtypeStruct((np_, ncols), jnp.float32),
        grid_spec=grid_spec,
        compiler_params=pltpu.CompilerParams(
            dimension_semantics=("parallel", "arbitrary"),
            vmem_limit_bytes=32 * 1024 * 1024),
    )(a_bf16, h_in, h_in, w1t, b1, ws, bs, w2t, b2)


def ben_sage_forward(x, edge_index, edge_weight, params):
    """Eval-mode forward of BenSAGE (dropout is identity)."""
    n = x.shape[0]
    convs = params["convs"]
    # TODO(synk): num_layers == 1 (no SAGEConv in convs) is not exercised by the
    # reference default and is not implemented in the fused path.
    assert len(convs) >= 1

    np_, tm, tk = _choose_tiles(n)
    a_bf16 = build_normalized_adjacency(edge_index, edge_weight, n, np_)
    x_p = jnp.pad(x.astype(jnp.float32), ((0, np_ - n), (0, 0)))

    w1t = params["first_lin_w"].T                 # (F, H)
    b1 = params["first_lin_b"].reshape(1, -1)
    w2t = params["lin2_w"].T                      # (H, C)
    b2 = params["lin2_b"].reshape(1, -1)

    h = x_p
    for li, cp in enumerate(convs):
        ws = jnp.concatenate([cp["wl"].T, cp["wr"].T], axis=0)   # (2H, H)
        bs = cp["b"].reshape(1, -1)
        h = fused_sage_layer(
            a_bf16, h, w1t, b1, ws, bs, w2t, b2,
            apply_first=(li == 0),                # fuse first_lin into layer 0
            apply_head=(li == len(convs) - 1),    # fuse lin2+log_softmax into last
            tm=tm, tk=tk)
    return h[:n]


# --------------------------- pure-JAX reference ---------------------------- #

def reference_forward(x, edge_index, edge_weight, params):
    n = x.shape[0]
    src, tgt = edge_index[0], edge_index[1]
    a = jnp.zeros((n, n), jnp.float32).at[tgt, src].add(edge_weight)
    deg = jnp.zeros((n,), jnp.float32).at[tgt].add(1.0)
    a = a / jnp.maximum(deg, 1.0)[:, None]
    h = jnp.maximum(x @ params["first_lin_w"].T + params["first_lin_b"], 0.0)
    for cp in params["convs"]:
        h = jnp.maximum((a @ h) @ cp["wl"].T + h @ cp["wr"].T + cp["b"], 0.0)
    logits = h @ params["lin2_w"].T + params["lin2_b"]
    return jax.nn.log_softmax(logits, axis=-1)


def init_params(key, num_layers=2, hidden=16, features_num=16, num_class=2):
    ks = jax.random.split(key, 4 + 3 * (num_layers - 1))
    scale = 0.1
    params = {
        "first_lin_w": scale * jax.random.normal(ks[0], (hidden, features_num), jnp.float32),
        "first_lin_b": scale * jax.random.normal(ks[1], (hidden,), jnp.float32),
        "lin2_w": scale * jax.random.normal(ks[2], (num_class, hidden), jnp.float32),
        "lin2_b": scale * jax.random.normal(ks[3], (num_class,), jnp.float32),
        "convs": [],
    }
    for i in range(num_layers - 1):
        k0, k1, k2 = ks[4 + 3 * i], ks[5 + 3 * i], ks[6 + 3 * i]
        params["convs"].append({
            "wl": scale * jax.random.normal(k0, (hidden, hidden), jnp.float32),
            "wr": scale * jax.random.normal(k1, (hidden, hidden), jnp.float32),
            "b": scale * jax.random.normal(k2, (hidden,), jnp.float32),
        })
    return params


def _run_case(key, num_nodes, num_edges, features_num=16, hidden=16, num_class=2):
    k_x, k_e, k_w, k_p = jax.random.split(key, 4)
    x = jax.random.normal(k_x, (num_nodes, features_num), jnp.float32)
    edge_index = jax.random.randint(k_e, (2, num_edges), 0, num_nodes, jnp.int32)
    edge_weight = jax.random.uniform(k_w, (num_edges,), jnp.float32)
    params = init_params(k_p, num_layers=2, hidden=hidden,
                         features_num=features_num, num_class=num_class)

    out = jax.block_until_ready(ben_sage_forward(x, edge_index, edge_weight, params))
    ref = jax.block_until_ready(reference_forward(x, edge_index, edge_weight, params))

    assert out.shape == (num_nodes, num_class)
    assert bool(jnp.all(jnp.isfinite(out)))
    # log_softmax rows exponentiate to ~1
    assert bool(jnp.allclose(jnp.sum(jnp.exp(out), axis=-1), 1.0, atol=1e-5))
    # match the f32 pure-JAX reference (A is streamed in bf16 -> small tolerance)
    assert bool(jnp.allclose(out, ref, atol=2e-2)), float(jnp.max(jnp.abs(out - ref)))


if __name__ == "__main__":
    key = jax.random.PRNGKey(0)
    k_small, k_big = jax.random.split(key, 2)

    # Small case at the module's default sizes (single tile, grid (1,1)).
    _run_case(k_small, num_nodes=8, num_edges=24)

    # Larger case that exercises the tiled grid (tm=256, tk=512, padded N=1536,
    # grid (6,3)), the bf16 A stream with Buffered(3), and the parallel row axis.
    _run_case(k_big, num_nodes=1500, num_edges=6000)

    print("KERNEL_OK")
</pallas_src>

<mosaic_0001>
module attributes {stable_mosaic.version = 11 : i64} {
  func.func @_fused_sage_kernel(%arg0: i32, %arg1: i32, %arg2: memref<8x8xbf16, #tpu.memory_space<vmem>>, %arg3: memref<8x16xf32, #tpu.memory_space<vmem>>, %arg4: memref<8x16xf32, #tpu.memory_space<vmem>>, %arg5: memref<16x16xf32, #tpu.memory_space<vmem>>, %arg6: memref<1x16xf32, #tpu.memory_space<vmem>>, %arg7: memref<32x16xf32, #tpu.memory_space<vmem>>, %arg8: memref<1x16xf32, #tpu.memory_space<vmem>>, %arg9: memref<16x2xf32, #tpu.memory_space<vmem>>, %arg10: memref<1x2xf32, #tpu.memory_space<vmem>>, %arg11: memref<8x2xf32, #tpu.memory_space<vmem>>, %arg12: memref<8x16xf32, #tpu.memory_space<vmem>>) attributes {dimension_semantics = [#tpu.dimension_semantics<parallel>, #tpu.dimension_semantics<arbitrary>], iteration_bounds = array<i64: 1, 1>, scalar_prefetch = 0 : i64, scratch_operands = 1 : i64, tpu.core_type = #tpu.core_type<tc>, window_params = [{transform_indices = @transform_0, window_bounds = array<i64: 8, 8>}, {transform_indices = @transform_1, window_bounds = array<i64: 8, 16>}, {transform_indices = @transform_2, window_bounds = array<i64: 8, 16>}, {pipeline_mode = #tpu.pipeline_mode<synchronous>, transform_indices = @transform_3, window_bounds = array<i64: 16, 16>}, {pipeline_mode = #tpu.pipeline_mode<synchronous>, transform_indices = @transform_4, window_bounds = array<i64: 1, 16>}, {pipeline_mode = #tpu.pipeline_mode<synchronous>, transform_indices = @transform_5, window_bounds = array<i64: 32, 16>}, {pipeline_mode = #tpu.pipeline_mode<synchronous>, transform_indices = @transform_6, window_bounds = array<i64: 1, 16>}, {pipeline_mode = #tpu.pipeline_mode<synchronous>, transform_indices = @transform_7, window_bounds = array<i64: 16, 2>}, {pipeline_mode = #tpu.pipeline_mode<synchronous>, transform_indices = @transform_8, window_bounds = array<i64: 1, 2>}, {transform_indices = @transform_9, window_bounds = array<i64: 8, 2>}]} {
    %c0_i32 = arith.constant 0 : i32
    %0 = arith.cmpi eq, %arg1, %c0_i32 : i32
    %1 = arith.extui %0 : i1 to i32
    %c0_i32_0 = arith.constant 0 : i32
    %2 = arith.cmpi ne, %1, %c0_i32_0 : i32
    scf.if %2 {
      %cst_16 = arith.constant 0.000000e+00 : f32
      %20 = vector.broadcast %cst_16 : f32 to vector<8x16xf32>
      %c0_17 = arith.constant 0 : index
      %c0_18 = arith.constant 0 : index
      %21 = vector.load %arg12[%c0_17, %c0_18] : memref<8x16xf32, #tpu.memory_space<vmem>>, vector<8x16xf32>
      tpu.vector_store %arg12[%c0_17, %c0_18], %20 {strides = array<i32>} : memref<8x16xf32, #tpu.memory_space<vmem>>, vector<8x16xf32>,
    } else {
    }
    %c0 = arith.constant 0 : index
    %c0_1 = arith.constant 0 : index
    %3 = vector.load %arg3[%c0, %c0_1] : memref<8x16xf32, #tpu.memory_space<vmem>>, vector<8x16xf32>
    %c0_2 = arith.constant 0 : index
    %c0_3 = arith.constant 0 : index
    %4 = vector.load %arg5[%c0_2, %c0_3] : memref<16x16xf32, #tpu.memory_space<vmem>>, vector<16x16xf32>
    %cst = arith.constant dense<0.000000e+00> : vector<8x16xf32>
    %5 = tpu.matmul %3, %4, %cst {dimension_numbers = #tpu.dot_dimension_numbers<[1], [0], [0], [1], [0, 0, 1, 1], [], []>} : vector<8x16xf32>, vector<16x16xf32>, vector<8x16xf32> -> vector<8x16xf32>
    %c0_4 = arith.constant 0 : index
    %c0_5 = arith.constant 0 : index
    %6 = vector.load %arg6[%c0_4, %c0_5] : memref<1x16xf32, #tpu.memory_space<vmem>>, vector<1x16xf32>
    %7 = vector.broadcast %6 : vector<1x16xf32> to vector<8x16xf32>
    %8 = arith.addf %5, %7 : vector<8x16xf32>
    %cst_6 = arith.constant 0.000000e+00 : f32
    %9 = vector.broadcast %cst_6 : f32 to vector<8x16xf32>
    %10 = arith.maximumf %8, %9 : vector<8x16xf32>
    %c0_7 = arith.constant 0 : index
    %c0_8 = arith.constant 0 : index
    %11 = vector.load %arg12[%c0_7, %c0_8] : memref<8x16xf32, #tpu.memory_space<vmem>>, vector<8x16xf32>
    %c0_9 = arith.constant 0 : index
    %c0_10 = arith.constant 0 : index
    %12 = vector.load %arg2[%c0_9, %c0_10] : memref<8x8xbf16, #tpu.memory_space<vmem>>, vector<8x8xbf16>
    %13 = arith.truncf %10 : vector<8x16xf32> to vector<8x16xbf16>
    %cst_11 = arith.constant dense<0.000000e+00> : vector<8x16xf32>
    %14 = tpu.matmul %12, %13, %cst_11 {dimension_numbers = #tpu.dot_dimension_numbers<[1], [0], [0], [1], [0, 0, 1, 1], [], []>} : vector<8x8xbf16>, vector<8x16xbf16>, vector<8x16xf32> -> vector<8x16xf32>
    %15 = arith.addf %11, %14 : vector<8x16xf32>
    %c0_12 = arith.constant 0 : index
    %c0_13 = arith.constant 0 : index
    %16 = vector.load %arg12[%c0_12, %c0_13] : memref<8x16xf32, #tpu.memory_space<vmem>>, vector<8x16xf32>
    tpu.vector_store %arg12[%c0_12, %c0_13], %15 {strides = array<i32>} : memref<8x16xf32, #tpu.memory_space<vmem>>, vector<8x16xf32>,
    %c0_i32_14 = arith.constant 0 : i32
    %17 = arith.cmpi eq, %arg1, %c0_i32_14 : i32
    %18 = arith.extui %17 : i1 to i32
    %c0_i32_15 = arith.constant 0 : i32
    %19 = arith.cmpi ne, %18, %c0_i32_15 : i32
    scf.if %19 {
      %c0_16 = arith.constant 0 : index
      %c0_17 = arith.constant 0 : index
      %20 = vector.load %arg4[%c0_16, %c0_17] : memref<8x16xf32, #tpu.memory_space<vmem>>, vector<8x16xf32>
      %c0_18 = arith.constant 0 : index
      %c0_19 = arith.constant 0 : index
      %21 = vector.load %arg5[%c0_18, %c0_19] : memref<16x16xf32, #tpu.memory_space<vmem>>, vector<16x16xf32>
      %cst_20 = arith.constant dense<0.000000e+00> : vector<8x16xf32>
      %22 = tpu.matmul %20, %21, %cst_20 {dimension_numbers = #tpu.dot_dimension_numbers<[1], [0], [0], [1], [0, 0, 1, 1], [], []>} : vector<8x16xf32>, vector<16x16xf32>, vector<8x16xf32> -> vector<8x16xf32>
      %c0_21 = arith.constant 0 : index
      %c0_22 = arith.constant 0 : index
      %23 = vector.load %arg6[%c0_21, %c0_22] : memref<1x16xf32, #tpu.memory_space<vmem>>, vector<1x16xf32>
      %24 = vector.broadcast %23 : vector<1x16xf32> to vector<8x16xf32>
      %25 = arith.addf %22, %24 : vector<8x16xf32>
      %cst_23 = arith.constant 0.000000e+00 : f32
      %26 = vector.broadcast %cst_23 : f32 to vector<8x16xf32>
      %27 = arith.maximumf %25, %26 : vector<8x16xf32>
      %c0_24 = arith.constant 0 : index
      %c0_25 = arith.constant 0 : index
      %28 = vector.load %arg12[%c0_24, %c0_25] : memref<8x16xf32, #tpu.memory_space<vmem>>, vector<8x16xf32>
      %29 = tpu.concatenate %28, %27 in 1 : vector<8x16xf32>, vector<8x16xf32> -> vector<8x32xf32>
      %c0_26 = arith.constant 0 : index
      %c0_27 = arith.constant 0 : index
      %30 = vector.load %arg7[%c0_26, %c0_27] : memref<32x16xf32, #tpu.memory_space<vmem>>, vector<32x16xf32>
      %cst_28 = arith.constant dense<0.000000e+00> : vector<8x16xf32>
      %31 = tpu.matmul %29, %30, %cst_28 {dimension_numbers = #tpu.dot_dimension_numbers<[1], [0], [0], [1], [0, 0, 1, 1], [], []>} : vector<8x32xf32>, vector<32x16xf32>, vector<8x16xf32> -> vector<8x16xf32>
      %c0_29 = arith.constant 0 : index
      %c0_30 = arith.constant 0 : index
      %32 = vector.load %arg8[%c0_29, %c0_30] : memref<1x16xf32, #tpu.memory_space<vmem>>, vector<1x16xf32>
      %33 = vector.broadcast %32 : vector<1x16xf32> to vector<8x16xf32>
      %34 = arith.addf %31, %33 : vector<8x16xf32>
      %cst_31 = arith.constant 0.000000e+00 : f32
      %35 = vector.broadcast %cst_31 : f32 to vector<8x16xf32>
      %36 = arith.maximumf %34, %35 : vector<8x16xf32>
      %c0_32 = arith.constant 0 : index
      %c0_33 = arith.constant 0 : index
      %37 = vector.load %arg9[%c0_32, %c0_33] : memref<16x2xf32, #tpu.memory_space<vmem>>, vector<16x2xf32>
      %cst_34 = arith.constant dense<0.000000e+00> : vector<8x2xf32>
      %38 = tpu.matmul %36, %37, %cst_34 {dimension_numbers = #tpu.dot_dimension_numbers<[1], [0], [0], [1], [0, 0, 1, 1], [], []>} : vector<8x16xf32>, vector<16x2xf32>, vector<8x2xf32> -> vector<8x2xf32>
      %c0_35 = arith.constant 0 : index
      %c0_36 = arith.constant 0 : index
      %39 = vector.load %arg10[%c0_35, %c0_36] : memref<1x2xf32, #tpu.memory_space<vmem>>, vector<1x2xf32>
      %40 = vector.broadcast %39 : vector<1x2xf32> to vector<8x2xf32>
      %41 = arith.addf %38, %40 : vector<8x2xf32>
      %cst_37 = arith.constant dense<0xFF800000> : vector<8xf32>
      %42 = vector.multi_reduction <maximumf>, %41, %cst_37 [1] : vector<8x2xf32> to vector<8xf32>
      %43 = vector.shape_cast %42 : vector<8xf32> to vector<8x1xf32>
      %44 = vector.broadcast %43 : vector<8x1xf32> to vector<8x2xf32>
      %45 = arith.subf %41, %44 : vector<8x2xf32>
      %46 = math.exp %45 : vector<8x2xf32>
      %cst_38 = arith.constant dense<0.000000e+00> : vector<8xf32>
      %47 = vector.multi_reduction <add>, %46, %cst_38 [1] : vector<8x2xf32> to vector<8xf32>
      %48 = vector.shape_cast %47 : vector<8xf32> to vector<8x1xf32>
      %49 = math.log %48 : vector<8x1xf32>
      %50 = vector.broadcast %49 : vector<8x1xf32> to vector<8x2xf32>
      %51 = arith.subf %45, %50 : vector<8x2xf32>
      %c0_39 = arith.constant 0 : index
      %c0_40 = arith.constant 0 : index
      %52 = vector.load %arg11[%c0_39, %c0_40] : memref<8x2xf32, #tpu.memory_space<vmem>>, vector<8x2xf32>
      tpu.vector_store %arg11[%c0_39, %c0_40], %51 {strides = array<i32>} : memref<8x2xf32, #tpu.memory_space<vmem>>, vector<8x2xf32>,
    } else {
    }
    return
  }
  func.func @transform_0(%arg0: i32, %arg1: i32) -> (i32, i32) {
    %c0_i32 = arith.constant 0 : i32
    return %arg0, %arg1 : i32, i32
  }
  func.func @transform_1(%arg0: i32, %arg1: i32) -> (i32, i32) {
    %c0_i32 = arith.constant 0 : i32
    %c0_i32_0 = arith.constant 0 : i32
    return %arg1, %c0_i32 : i32, i32
  }
  func.func @transform_2(%arg0: i32, %arg1: i32) -> (i32, i32) {
    %c0_i32 = arith.constant 0 : i32
    %c0_i32_0 = arith.constant 0 : i32
    return %arg0, %c0_i32 : i32, i32
  }
  func.func @transform_3(%arg0: i32, %arg1: i32) -> (i32, i32) {
    %c0_i32 = arith.constant 0 : i32
    %c0_i32_0 = arith.constant 0 : i32
    %c0_i32_1 = arith.constant 0 : i32
    return %c0_i32, %c0_i32_0 : i32, i32
  }
  func.func @transform_4(%arg0: i32, %arg1: i32) -> (i32, i32) {
    %c0_i32 = arith.constant 0 : i32
    %c0_i32_0 = arith.constant 0 : i32
    %c0_i32_1 = arith.constant 0 : i32
    return %c0_i32, %c0_i32_0 : i32, i32
  }
  func.func @transform_5(%arg0: i32, %arg1: i32) -> (i32, i32) {
    %c0_i32 = arith.constant 0 : i32
    %c0_i32_0 = arith.constant 0 : i32
    %c0_i32_1 = arith.constant 0 : i32
    return %c0_i32, %c0_i32_0 : i32, i32
  }
  func.func @transform_6(%arg0: i32, %arg1: i32) -> (i32, i32) {
    %c0_i32 = arith.constant 0 : i32
    %c0_i32_0 = arith.constant 0 : i32
    %c0_i32_1 = arith.constant 0 : i32
    return %c0_i32, %c0_i32_0 : i32, i32
  }
  func.func @transform_7(%arg0: i32, %arg1: i32) -> (i32, i32) {
    %c0_i32 = arith.constant 0 : i32
    %c0_i32_0 = arith.constant 0 : i32
    %c0_i32_1 = arith.constant 0 : i32
    return %c0_i32, %c0_i32_0 : i32, i32
  }
  func.func @transform_8(%arg0: i32, %arg1: i32) -> (i32, i32) {
    %c0_i32 = arith.constant 0 : i32
    %c0_i32_0 = arith.constant 0 : i32
    %c0_i32_1 = arith.constant 0 : i32
    return %c0_i32, %c0_i32_0 : i32, i32
  }
  func.func @transform_9(%arg0: i32, %arg1: i32) -> (i32, i32) {
    %c0_i32 = arith.constant 0 : i32
    %c0_i32_0 = arith.constant 0 : i32
    return %arg0, %c0_i32 : i32, i32
  }
}

</mosaic_0001>

<bundles_post_ra>
// kernel: tpu_custom_call.1
= control target key start
LH: loop header
LB: loop body
LE: loop exit
PB: predicated region body
PF: predicated region fallthrough
CT: control target
= control target key end

     0   :  { %vm37_vm0 = vcmask 130048   ;;  %v232_v4 = vmov 0.0   ;;  %vm78_vm1 = vcmask 1043456   ;;  %vm74_vm2 = vcmask 64512   ;;  %s233_s20 = smov 16   ;;  %s341_s3 = inlined_call_operand.vmem [shape: f32[16,16], index: 3, kind: input, shape index: {}]   ;;  %s342_s1 = inlined_call_operand.vmem [shape: f32[8,16], index: 1, kind: input, shape index: {}]   ;;  %s343_s2 = inlined_call_operand.vmem [shape: f32[8,16], index: 2, kind: input, shape index: {}]   ;;  %s344_s4 = inlined_call_operand.vmem [shape: f32[1,16], index: 4, kind: input, shape index: {}]   ;;  %s345_s0 = inlined_call_operand.vmem [shape: bf16[8,8], index: 0, kind: input, shape index: {}]   ;;  %s346_s6 = inlined_call_operand.vmem [shape: f32[1,16], index: 6, kind: input, shape index: {}]   ;;  %s347_s5 = inlined_call_operand.vmem [shape: f32[32,16], index: 5, kind: input, shape index: {}]   ;;  %s348_s7 = inlined_call_operand.vmem [shape: f32[16,2], index: 7, kind: input, shape index: {}]   ;;  %s349_s8 = inlined_call_operand.vmem [shape: f32[1,2], index: 8, kind: input, shape index: {}]   ;;  %s350_s9 = inlined_call_operand.vmem [shape: f32[8,2], index: 9, kind: output, shape index: {}]  }
   0x1   :  { %v41_v0 = vld [vmem:[%s341_s3 + $0x8] sm:$0xff]  ;;  %v40_v1 = vld [vmem:[%s341_s3] sm:$0xff]  ;;  %38 = vst.msk [vmem:[#allocation2] sm:$0xff] %vm37_vm0, %v232_v4  ;;  %v140_v16 = vld [vmem:[%s347_s5 + $0x18] sm:$0xff]  ;;  %vm145_vm3 = vcmask 261120   ;;  %vm199_vm4 = vcmask 15360  }
   0x2   :  { %64 = vmatpush.msra.mxu0 %v41_v0  ;;  %v39_v2 = vld [vmem:[%s342_s1] sm:$0xff]  ;;  %124 = vmatpush.msra.mxu2 %v41_v0  ;;  %v139_v17 = vld [vmem:[%s347_s5 + $0x10] sm:$0xff]  ;;  %v138_v18 = vld [vmem:[%s347_s5 + $0x8] sm:$0xff] }
   0x3   :  { %v100_v3 = vld [vmem:[%s343_s2] sm:$0xff]  ;;  %161 = vmatpush.msra.mxu3 %v140_v16  ;;  %v171_v20 = vld [vmem:[%s348_s7 + $0x8] sm:$0xff] }
   0x4   :  { %65 = vmatpush.msra.mxu0 %v40_v1  ;;  %125 = vmatpush.msra.mxu2 %v40_v1  ;;  %v224_v5 = vld [vmem:[%s344_s4] ss:$0 sm:$0xff] }
   0x5   :  { %217 = vmatmul.msk.f32.vlgmr.msra.gmra.mxu0 %vm37_vm0, %v39_v2  ;;  %219 = vmatmul.msk.f32.vlgmr.msra.gmra.mxu2 %vm37_vm0, %v100_v3  ;;  %v225_v9 = vld [vmem:[%s344_s4] ss:$0 sm:$0xff] }
   0x6   :  { %v72_v14 = vld [vmem:[%s345_s0] sm:$0xf]  ;;  %162 = vmatpush.msra.mxu3 %v139_v17  ;;  %193 = vmatpush.msrb.mxu0 %v171_v20 }
   0x7   :  { %v137_v19 = vld [vmem:[%s347_s5] sm:$0xff] }
   0x8   :  { %163 = vmatpush.msra.mxu3 %v138_v18  ;;  %v71_v21 = vld [vmem:[#allocation2] sm:$0xff] }
   0x9   :  { %v170_v28 = vld [vmem:[%s348_s7] sm:$0xff] }
   0xa   :  { %164 = vmatpush.msra.mxu3 %v137_v19  ;;  %194 = vmatpush.msrb.mxu0 %v170_v28  ;;  %v226_v29 = vld [vmem:[%s346_s6] ss:$0 sm:$0xff] }
   0xb   :  { %v227_v33 = vld [vmem:[%s349_s8] ss:$0 sm:$0xff] }
  0x82   :  { %v67_v6 = vpop.f32.mrf.mxu0 }
  0x83   :  { %v68_v7 = vadd.f32 %v224_v5, %v67_v6 }
  0x85   :  { %v70_v8 = vmax.f32 %v68_v7, 0.0 }
  0x87   :  { %v73_v10 = vpack.c.bf16 %v70_v8, %v70_v8 }
  0x88   :  { %v127_v11 = vpop.f32.mrf.mxu2 }
  0x89   :  { %v80_v12 = vsel %vm78_vm1, %v73_v10, 0  ;;  %v128_v13 = vadd.f32 %v225_v9, %v127_v11 }
  0x8a   :  { %89 = vmatpush.bf16.msra.mxu1 %v80_v12 }
  0x8b   :  { %v130_v15 = vmax.f32 %v128_v13, 0.0 }
  0x8d   :  { %218 = vmatmul.msk.bf16.vlgmr.msra.gmra.mxu1 %vm74_vm2, %v72_v14  ;;  %133 = vrot.lane.b32.xlu0 %v130_v15, %s233_s20 }
  0xff   :  { %v134_v25 = vpop.permute.xlu0 %133 }
 0x10a   :  { %v91_v22 = vpop.f32.mrf.mxu1 }
 0x10b   :  { %v95_v23 = vadd.f32 %v91_v22, %v71_v21 }
 0x10d   :  { %96 = vst.msk [vmem:[#allocation2] sm:$0xff] %vm37_vm0, %v95_v23 }
 0x112   :  { %v93_v24 = vpop.f32.mrf.mxu1 }
 0x114   :  { %v131_v26 = vld [vmem:[#allocation2] sm:$0xff] }
 0x115   :  { %v136_v27 = vsel %vm37_vm0, %v131_v26, %v134_v25 }
 0x116   :  { %220 = vmatmul.msk.f32.vlgmr.msra.gmra.mxu3 %vm145_vm3, %v136_v27 }
 0x199   :  { %v166_v30 = vpop.f32.mrf.mxu3 }
 0x19a   :  { %v167_v31 = vadd.f32 %v226_v29, %v166_v30 }
 0x19c   :  { %v169_v32 = vmax.f32 %v167_v31, 0.0 }
 0x19e   :  { %221 = vmatmul.msk.f32.vlgmr.msrb.gmra.mxu0 %vm37_vm0, %v169_v32 }
 0x21b   :  { %v196_v34 = vpop.f32.mrf.mxu0 }
 0x21c   :  { %v197_v35 = vadd.f32 %v227_v33, %v196_v34 }
 0x21e   :  { %v200_v36 = vsel %vm199_vm4, %v197_v35, -inf }
 0x21f   :  { %201 = vmax.xlane.f32.xlu0 %v200_v36 }
 0x292   :  { %v202_v37 = vpop.xlane.xlu0 %201 }
 0x293   :  { %v203_v38 = vsub.f32 %v197_v35, %v202_v37 }
 0x295   :  { %v204_v39 = vmul.f32 1.442695, %v203_v38 }
 0x297   :  { %228 = vpow2.f32 %v204_v39 }
 0x29d   :  { %v229_v40 = vpop.eup %228 }
 0x29e   :  { %v206_v41 = vsel %vm199_vm4, %v229_v40, 0.0 }
 0x29f   :  { %207 = vadd.xlane.f32.xlu1 %v206_v41 }
 0x312   :  { %v208_v42 = vpop.xlane.xlu1 %207 }
 0x313   :  { %230 = vlog2.f32 %v208_v42 }
 0x319   :  { %v231_v43 = vpop.eup %230 }
 0x31a   :  { %v210_v44 = vmul.f32 0.6931472, %v231_v43 }
 0x31c   :  { %v211_v45 = vsub.f32 %v203_v38, %v210_v44 }
 0x31e   :  { %212 = vst.msk [vmem:[%s350_s9] sm:$0xff] %vm199_vm4, %v211_v45 }

</bundles_post_ra>
